<compile_context>
chip_gen: v7x
topology: tpu7x:2x2x1
jax: 0.10.0
libtpu: 0.0.40
codegen_flags: <defaults>
</compile_context>

<pallas_src>
import math
import numpy as np
import jax
import jax.numpy as jnp
from jax.experimental import pallas as pl
from jax.experimental.pallas import tpu as pltpu


# ------------------------------ tiling helpers ---------------------------------

_VMEM_LIMIT_CACHE = None


def _vmem_limit_bytes():
    """Per-generation scoped-VMEM budget: ~3/4 of physical, capped at 100 MiB."""
    global _VMEM_LIMIT_CACHE
    if _VMEM_LIMIT_CACHE is None:
        cap = None
        try:
            info = pltpu.get_tpu_info()
            cap = getattr(info, "vmem_capacity_bytes", None)
        except Exception:
            cap = None
        if not cap:
            cap = 64 * 1024 * 1024          # conservative (v7x) fallback
        _VMEM_LIMIT_CACHE = int(max(32 * 1024 * 1024,
                                    min(cap * 3 // 4, 100 * 1024 * 1024)))
    return _VMEM_LIMIT_CACHE


def _compiler_params(semantics):
    return pltpu.CompilerParams(dimension_semantics=semantics,
                                vmem_limit_bytes=_vmem_limit_bytes())


def _blk(dim, pref):
    # full-dim block for small arrays (always legal), otherwise an aligned tile.
    return dim if dim <= pref else pref


def _rot_footprint(tm, tk, tn, kr, has_mask):
    # rough double-buffered VMEM bytes for one rotation grid step
    b = 2 * tk * tn * 2                       # R_comb bf16
    b += 2 * tm * tn * 4                      # f32 output block (accumulator-resident)
    if kr:
        b += 2 * (tm * kr + kr * tk) * 2      # U_scaled / Vh bf16
    else:
        b += 2 * tm * tk * 2                  # W bf16
    if has_mask:
        b += 2 * tm * tk                      # int8 mask
    return b


def _rotate_tiles(M, D, N, kr, has_mask):
    budget = int(_vmem_limit_bytes() * 0.7)
    tm = _blk(M, 512)
    candidates = ((D, N),                                   # R_comb fully VMEM-resident
                  (_blk(D, 2048), _blk(N, 1024)),
                  (_blk(D, 1024), _blk(N, 512)),
                  (_blk(D, 512), _blk(N, 256)))
    for tk, tn in candidates:
        if _rot_footprint(tm, tk, tn, kr, has_mask) <= budget:
            return tm, tk, tn
    return _blk(M, 128), _blk(D, 512), _blk(N, 256)


# ----------------------------- Pallas kernels ----------------------------------
# Low-rank reconstruction (decomposition without a following rotation).

def _lowrank_kernel(u_ref, vh_ref, o_ref):
    o_ref[...] = jnp.dot(u_ref[...], vh_ref[...], preferred_element_type=jnp.float32)


def _lowrank_masked_kernel(u_ref, vh_ref, m_ref, o_ref):
    rec = jnp.dot(u_ref[...], vh_ref[...], preferred_element_type=jnp.float32)
    o_ref[...] = rec * m_ref[...].astype(jnp.float32)


def lowrank_reconstruct(u_scaled_b, vh_b, mask_i8=None):
    M, Kr = u_scaled_b.shape
    _, N = vh_b.shape
    tm = _blk(M, 512)
    tn = _blk(N, 1024)
    grid = (pl.cdiv(M, tm), pl.cdiv(N, tn))
    u_spec = pl.BlockSpec((tm, Kr), lambda i, j: (i, 0))
    vh_spec = pl.BlockSpec((Kr, tn), lambda i, j: (0, j))
    o_spec = pl.BlockSpec((tm, tn), lambda i, j: (i, j))
    cp = _compiler_params(("parallel", "parallel"))
    out_shape = jax.ShapeDtypeStruct((M, N), jnp.float32)
    if mask_i8 is None:
        return pl.pallas_call(_lowrank_kernel, out_shape=out_shape, grid=grid,
                              in_specs=[u_spec, vh_spec], out_specs=o_spec,
                              compiler_params=cp)(u_scaled_b, vh_b)
    m_spec = pl.BlockSpec((tm, tn), lambda i, j: (i, j))
    return pl.pallas_call(_lowrank_masked_kernel, out_shape=out_shape, grid=grid,
                          in_specs=[u_spec, vh_spec, m_spec], out_specs=o_spec,
                          compiler_params=cp)(u_scaled_b, vh_b, mask_i8)


# Standalone mask pruning (only when no rotation follows and no factors exist).

def _prune_kernel(w_ref, m_ref, o_ref):
    o_ref[...] = w_ref[...] * m_ref[...].astype(w_ref.dtype)


def prune(w2d, mask_i8):
    M, N = w2d.shape
    tm = _blk(M, 512)
    tn = _blk(N, 1024)
    grid = (pl.cdiv(M, tm), pl.cdiv(N, tn))
    return pl.pallas_call(
        _prune_kernel,
        out_shape=jax.ShapeDtypeStruct((M, N), jnp.float32),
        grid=grid,
        in_specs=[pl.BlockSpec((tm, tn), lambda i, j: (i, j)),
                  pl.BlockSpec((tm, tn), lambda i, j: (i, j))],
        out_specs=pl.BlockSpec((tm, tn), lambda i, j: (i, j)),
        compiler_params=_compiler_params(("parallel", "parallel")),
    )(w2d, mask_i8)


# Rotation kernels: contraction over D tiled by grid axis 2, accumulated into the
# resident f32 output block. Optional fused low-rank reconstruction / mask prologue.

def _rot_kernel(w_ref, r_ref, o_ref):
    @pl.when(pl.program_id(2) == 0)
    def _():
        o_ref[...] = jnp.zeros_like(o_ref)
    o_ref[...] += jnp.dot(w_ref[...], r_ref[...], preferred_element_type=jnp.float32)


def _rot_masked_kernel(w_ref, m_ref, r_ref, o_ref):
    @pl.when(pl.program_id(2) == 0)
    def _():
        o_ref[...] = jnp.zeros_like(o_ref)
    wm = w_ref[...] * m_ref[...].astype(w_ref.dtype)
    o_ref[...] += jnp.dot(wm, r_ref[...], preferred_element_type=jnp.float32)


def _rot_fused_kernel(u_ref, vh_ref, r_ref, o_ref):
    @pl.when(pl.program_id(2) == 0)
    def _():
        o_ref[...] = jnp.zeros_like(o_ref)
    rec = jnp.dot(u_ref[...], vh_ref[...], preferred_element_type=jnp.float32)
    o_ref[...] += jnp.dot(rec.astype(jnp.bfloat16), r_ref[...],
                          preferred_element_type=jnp.float32)


def _rot_fused_masked_kernel(u_ref, vh_ref, m_ref, r_ref, o_ref):
    @pl.when(pl.program_id(2) == 0)
    def _():
        o_ref[...] = jnp.zeros_like(o_ref)
    rec = jnp.dot(u_ref[...], vh_ref[...], preferred_element_type=jnp.float32)
    rec = rec * m_ref[...].astype(jnp.float32)
    o_ref[...] += jnp.dot(rec.astype(jnp.bfloat16), r_ref[...],
                          preferred_element_type=jnp.float32)


def rotate(r_comb_b, w2d_b=None, mask_i8=None, factors=None):
    """out = (recon_or_W * mask) @ R_comb, fused in one kernel.

    r_comb_b: (D, N) bf16; w2d_b: (M, D) bf16 or None; mask_i8: (M, D) int8 or None;
    factors: (u_scaled_bf16 (M, Kr), vh_bf16 (Kr, D)) or None.
    """
    D, N = r_comb_b.shape
    if factors is not None:
        u_b, vh_b = factors
        M, Kr = u_b.shape
    else:
        M = w2d_b.shape[0]
        Kr = 0
    tm, tk, tn = _rotate_tiles(M, D, N, Kr, mask_i8 is not None)
    grid = (pl.cdiv(M, tm), pl.cdiv(N, tn), pl.cdiv(D, tk))
    o_spec = pl.BlockSpec((tm, tn), lambda i, j, k: (i, j))
    r_spec = pl.BlockSpec((tk, tn), lambda i, j, k: (k, j))
    cp = _compiler_params(("parallel", "parallel", "arbitrary"))
    out_shape = jax.ShapeDtypeStruct((M, N), jnp.float32)
    if factors is not None:
        u_spec = pl.BlockSpec((tm, Kr), lambda i, j, k: (i, 0))
        vh_spec = pl.BlockSpec((Kr, tk), lambda i, j, k: (0, k))
        if mask_i8 is None:
            return pl.pallas_call(_rot_fused_kernel, out_shape=out_shape, grid=grid,
                                  in_specs=[u_spec, vh_spec, r_spec], out_specs=o_spec,
                                  compiler_params=cp)(u_b, vh_b, r_comb_b)
        m_spec = pl.BlockSpec((tm, tk), lambda i, j, k: (i, k))
        return pl.pallas_call(_rot_fused_masked_kernel, out_shape=out_shape, grid=grid,
                              in_specs=[u_spec, vh_spec, m_spec, r_spec],
                              out_specs=o_spec, compiler_params=cp,
                              )(u_b, vh_b, mask_i8, r_comb_b)
    w_spec = pl.BlockSpec((tm, tk), lambda i, j, k: (i, k))
    if mask_i8 is None:
        return pl.pallas_call(_rot_kernel, out_shape=out_shape, grid=grid,
                              in_specs=[w_spec, r_spec], out_specs=o_spec,
                              compiler_params=cp)(w2d_b, r_comb_b)
    m_spec = pl.BlockSpec((tm, tk), lambda i, j, k: (i, k))
    return pl.pallas_call(_rot_masked_kernel, out_shape=out_shape, grid=grid,
                          in_specs=[w_spec, m_spec, r_spec], out_specs=o_spec,
                          compiler_params=cp)(w2d_b, mask_i8, r_comb_b)


# ---------------------------- Module (glue + state) ----------------------------

class QuantumWeightOptimizationModule:
    def __init__(self, embedding_dim, sparsity_target=0.8, rank_threshold=0.1,
                 num_rotations=4, update_interval=100, dynamic_sparsity=True,
                 rotation_scale=0.1, min_eigenvalues=1, max_eigenvalues=16,
                 adaptive_threshold=True, key=None):
        if key is None:
            key = jax.random.PRNGKey(0)
        self.embedding_dim = embedding_dim
        self.sparsity_target = sparsity_target
        self.rank_threshold = rank_threshold
        self.num_rotations = num_rotations
        self.update_interval = update_interval
        self.dynamic_sparsity = dynamic_sparsity
        self.rotation_scale = rotation_scale
        self.min_eigenvalues = min_eigenvalues
        self.max_eigenvalues = max_eigenvalues
        self.adaptive_threshold = adaptive_threshold

        self.training = True
        self.step_counter = 0
        self.current_sparsity = 0.5
        self.sparsity_growth_rate = 0.01
        self.masks = {}
        self._mask_sparsity = {}          # cached realized sparsity (host float)
        self.optimization_quality = {}
        self.total_params = 0.0
        self.masked_params = 0.0

        keys = jax.random.split(key, num_rotations + 4)
        rots = [self._init_rotation_matrix(keys[i]) for i in range(num_rotations)]
        self.rotation_matrices = jnp.stack(rots, axis=0)        # (R, D, D)

        D, H = embedding_dim, embedding_dim // 2
        kw1, kw2, kb1, kb2 = keys[num_rotations:num_rotations + 4]
        lim1, lim2 = 1.0 / math.sqrt(D), 1.0 / math.sqrt(H)
        self.predictor_params = {
            "w1": jax.random.uniform(kw1, (D, H), jnp.float32, -lim1, lim1),
            "b1": jax.random.uniform(kb1, (1, H), jnp.float32, -lim1, lim1),
            "gamma": jnp.ones((1, H), jnp.float32),
            "beta": jnp.zeros((1, H), jnp.float32),
            "w2": jax.random.uniform(kw2, (H, num_rotations), jnp.float32, -lim2, lim2),
            "b2": jax.random.uniform(kb2, (1, num_rotations), jnp.float32, -lim2, lim2),
        }

    def _init_rotation_matrix(self, key):
        D = self.embedding_dim
        rm = jax.random.normal(key, (D, D), dtype=jnp.float32)
        q, r = jnp.linalg.qr(rm)
        ph = jnp.sign(jnp.diag(r))
        q = q * ph[None, :]
        eye = jnp.eye(D, dtype=jnp.float32)
        return eye + (q - eye) * self.rotation_scale

    # ---- ParameterEigenDecomposition ----
    def _compute_optimal_rank_device(self, s):
        # Device-side version of compute_optimal_rank (no per-tensor host sync).
        s = s.astype(jnp.float32)
        s0 = s[0]
        normalized = jnp.where(s0 > 0, s / s0, s)
        cumulative = jnp.cumsum(normalized)
        total = cumulative[-1]
        threshold = jnp.float32(self.rank_threshold)
        if self.adaptive_threshold:
            skew = jnp.where(normalized[0] > 0,
                             (normalized[0] - normalized[-1]) / normalized[0], 0.0)
            threshold = self.rank_threshold * (1.0 - 0.5 * skew)
        hit = (cumulative / total) >= (1.0 - threshold)
        rank = jnp.where(jnp.any(hit), jnp.argmax(hit) + 1, 0)
        return jnp.clip(rank, self.min_eigenvalues, self.max_eigenvalues).astype(jnp.int32)

    def _eigen_decomposition(self, weights, defer=False):
        reconstructed = {}
        deferred_factors = {}
        metadata = {"decompositions": {}, "optimal_ranks": {}, "compression_ratios": {}}
        rank_scalars = {}
        shape_info = {}
        for name, w in weights.items():
            if not hasattr(w, "ndim") or w.ndim < 2:
                reconstructed[name] = w
                continue
            orig_shape = w.shape
            w2d = w.reshape(orig_shape[0], -1).astype(jnp.float32)
            # TODO(synk): SVD has no Pallas equivalent; it runs via jnp.linalg.svd (XLA),
            # only the low-rank reconstruction / rotation matmuls run in Pallas kernels.
            U, S, Vh = jnp.linalg.svd(w2d, full_matrices=False)
            K = int(S.shape[0])
            rank = self._compute_optimal_rank_device(S)          # device scalar
            # Static truncation: rank <= max_eigenvalues, so the contraction dim
            # never needs more than Kr columns; singular values beyond the optimal
            # rank are zeroed, making this exactly the truncated reconstruction.
            Kr = min(K, self.max_eigenvalues)
            s_masked = jnp.where(jnp.arange(Kr) < rank, S[:Kr], 0.0)
            u_scaled = (U[:, :Kr] * s_masked[None, :]).astype(jnp.bfloat16)
            vh_b = Vh[:Kr, :].astype(jnp.bfloat16)
            if defer:
                # Reconstruction is fused into a later (pruning/rotation) kernel;
                # keep the original tensor only as a shape-carrying placeholder.
                deferred_factors[name] = (u_scaled, vh_b)
                reconstructed[name] = w
            else:
                recon2d = lowrank_reconstruct(u_scaled, vh_b)
                reconstructed[name] = recon2d.reshape(orig_shape)
            rank_scalars[name] = rank
            shape_info[name] = (tuple(U.shape), tuple(S.shape), tuple(Vh.shape), orig_shape)
        ranks_host = jax.device_get(rank_scalars)                # single batched sync
        for name, r in ranks_host.items():
            U_shape, S_shape, Vh_shape, orig_shape = shape_info[name]
            r = int(r)
            original_params = int(np.prod(orig_shape))
            compressed_params = U_shape[0] * r + r + Vh_shape[1] * r
            metadata["decompositions"][name] = {"U_shape": U_shape,
                                                "S_shape": S_shape,
                                                "V_shape": (Vh_shape[1], Vh_shape[0])}
            metadata["optimal_ranks"][name] = r
            metadata["compression_ratios"][name] = compressed_params / original_params
        return reconstructed, metadata, deferred_factors

    # ---- QuantumStructuredPruning ----
    def _get_current_sparsity(self):
        if self.dynamic_sparsity:
            return min(self.sparsity_target, self.current_sparsity)
        return self.sparsity_target

    def _update_sparsity(self):
        if not self.dynamic_sparsity or not self.training:
            return
        self.current_sparsity = min(self.sparsity_target,
                                    self.current_sparsity + self.sparsity_growth_rate)

    def _create_structured_mask(self, shape, sparsity):
        # TODO(synk): PatternType / MaskType / apply_mask_to_parameter are external and
        # not provided; a deterministic harmonic interference pattern + binary
        # threshold at the requested sparsity level is used instead.
        if len(shape) != 2:
            rows = shape[0]
            cols = int(np.prod(shape[1:])) if len(shape) > 1 else 1
        else:
            rows, cols = shape
        i = jnp.arange(rows, dtype=jnp.float32)[:, None]
        j = jnp.arange(cols, dtype=jnp.float32)[None, :]
        score = jnp.abs(jnp.sin(jnp.pi * (i + 1.0) / rows) * jnp.cos(jnp.pi * (j + 1.0) / cols)
                        + 0.5 * jnp.sin(2.0 * jnp.pi * (i * cols + j) / (rows * cols)))
        thr = jnp.quantile(score.reshape(-1), sparsity)
        mask = (score > thr).astype(jnp.float32)
        return mask.reshape(shape)

    def _structured_pruning(self, weights, defer=False, deferred_factors=None):
        deferred_factors = deferred_factors or {}
        current_sparsity = self._get_current_sparsity()
        pruned = {}
        deferred_masks = {}
        metadata = {"masks": {}, "sparsity_levels": {}, "params_masked": {}}
        masked_scalars = {}
        sizes = {}
        for name, w in weights.items():
            if not hasattr(w, "ndim") or w.ndim < 2:
                pruned[name] = w
                continue
            mask = self.masks.get(name)
            stored_sparsity = self._mask_sparsity.get(name)
            if mask is None or (stored_sparsity is not None and
                                abs(stored_sparsity - current_sparsity) > 0.05):
                mask = self._create_structured_mask(w.shape, current_sparsity)
                self.masks[name] = mask
                # one host fetch per mask (re)creation only; cached afterwards so
                # steady-state calls stay fully device-side.
                self._mask_sparsity[name] = 1.0 - float(jnp.sum(mask)) / mask.size
            m2d_i8 = mask.reshape(mask.shape[0], -1).astype(jnp.int8)
            if defer:
                # mask multiply is fused into the downstream rotation kernel prologue
                pruned[name] = w
                deferred_masks[name] = m2d_i8
            else:
                fac = deferred_factors.get(name)
                if fac is not None:
                    # decomposition deferred to here: (U_s @ Vh) * mask in one kernel
                    u_b, vh_b = fac
                    pruned[name] = lowrank_reconstruct(u_b, vh_b,
                                                       mask_i8=m2d_i8).reshape(w.shape)
                else:
                    w2d = w.reshape(w.shape[0], -1).astype(jnp.float32)
                    pruned[name] = prune(w2d, m2d_i8).reshape(w.shape)
            masked_scalars[name] = jnp.sum(mask == 0).astype(jnp.int32)
            sizes[name] = int(np.prod(w.shape))
            metadata["masks"][name] = mask
        masked_host = jax.device_get(masked_scalars)             # single batched sync
        total_params, total_masked = 0, 0
        for name, mcount in masked_host.items():
            mcount = int(mcount)
            total_w = sizes[name]
            metadata["sparsity_levels"][name] = mcount / total_w
            metadata["params_masked"][name] = mcount
            total_params += total_w
            total_masked += mcount
        self.total_params = float(total_params)
        self.masked_params = float(total_masked)
        self._update_sparsity()
        return pruned, metadata, deferred_masks

    # ---- QuantumRotationalInvariance ----
    def _rotation_predictor(self, x):
        # Tiny MLP (D -> D/2 -> R, batch<=few hundred): plain XLA — a pallas_call
        # launch plus sub-(8,128) tiles would cost more than the compute itself.
        p = self.predictor_params
        h = x @ p["w1"] + p["b1"]
        mu = jnp.mean(h, axis=-1, keepdims=True)
        var = jnp.mean(jnp.square(h - mu), axis=-1, keepdims=True)
        hn = (h - mu) * jax.lax.rsqrt(var + 1e-5) * p["gamma"] + p["beta"]
        hg = 0.5 * hn * (1.0 + jax.lax.erf(hn * 0.7071067811865476))
        logits = hg @ p["w2"] + p["b2"]
        m = jnp.max(logits, axis=-1, keepdims=True)
        e = jnp.exp(logits - m)
        prob = e / jnp.sum(e, axis=-1, keepdims=True)
        return jnp.mean(prob, axis=0)

    def _rotational_invariance(self, weights, input_features,
                               deferred_masks=None, deferred_factors=None):
        deferred_masks = deferred_masks or {}
        deferred_factors = deferred_factors or {}
        transformed = {}
        metadata = {"rotation_weights": None, "transformed_shapes": {}}
        if input_features is not None:
            rot_w = self._rotation_predictor(input_features.astype(jnp.float32))
        else:
            rot_w = jnp.ones((self.num_rotations,), jnp.float32) / self.num_rotations
        metadata["rotation_weights"] = [float(x) for x in np.asarray(rot_w)]
        # Linearity: sum_i rw[i] * (W @ R_i) == W @ (sum_i rw[i] * R_i)
        # -> combine once (cheap (R,D,D) reduce), then ONE fused matmul per weight.
        r_comb = jnp.tensordot(rot_w.astype(jnp.float32),
                               self.rotation_matrices, axes=1)
        r_comb_b = r_comb.astype(jnp.bfloat16)
        for name, w in weights.items():
            if not hasattr(w, "ndim") or w.ndim < 2:
                transformed[name] = w
                continue
            orig_shape = w.shape
            M = orig_shape[0]
            cols = int(np.prod(orig_shape[1:]))
            m2d = deferred_masks.get(name)
            fac = deferred_factors.get(name)
            if cols != self.embedding_dim:
                # TODO(synk): rotation matrices are (D, D); a weight whose flattened
                # column count != embedding_dim cannot be rotated — materialize any
                # deferred reconstruction / pruning and pass it through unrotated.
                if fac is not None:
                    u_b, vh_b = fac
                    t2d = lowrank_reconstruct(u_b, vh_b, mask_i8=m2d)
                elif m2d is not None:
                    t2d = prune(w.reshape(M, -1).astype(jnp.float32), m2d)
                else:
                    t2d = w.reshape(M, -1).astype(jnp.float32)
            else:
                if fac is not None:
                    t2d = rotate(r_comb_b, factors=fac, mask_i8=m2d)
                else:
                    w2d_b = w.reshape(M, -1).astype(jnp.bfloat16)
                    t2d = rotate(r_comb_b, w2d_b=w2d_b, mask_i8=m2d)
            transformed[name] = t2d.reshape(orig_shape)
            metadata["transformed_shapes"][name] = list(orig_shape)
        return transformed, metadata

    # ---- top-level forward ----
    def _should_update_optimizations(self):
        if not self.training:
            return False
        self.step_counter += 1
        if self.step_counter >= self.update_interval:
            self.step_counter = 0
            return True
        return False

    def __call__(self, weights, input_features=None,
                 active_optimizations=("decomposition", "pruning", "rotation")):
        should_update = self._should_update_optimizations()
        do_decomp = "decomposition" in active_optimizations and should_update
        do_prune = "pruning" in active_optimizations
        do_rot = "rotation" in active_optimizations and should_update
        optimized = dict(weights)
        metadata = {"update_performed": should_update,
                    "active_optimizations": list(active_optimizations),
                    "optimization_steps": {}}
        deferred_factors = {}
        deferred_masks = {}
        if do_decomp:
            # Defer materialization whenever a later stage can fuse the reconstruction.
            optimized, decomp_md, deferred_factors = self._eigen_decomposition(
                optimized, defer=(do_prune or do_rot))
            metadata["optimization_steps"]["decomposition"] = decomp_md
        if do_prune:
            # When rotation follows, defer the mask multiply and fuse it into the
            # rotation matmul prologue; otherwise fuse any deferred reconstruction
            # here ((U_s @ Vh) * mask in one kernel).
            optimized, prune_md, deferred_masks = self._structured_pruning(
                optimized, defer=do_rot,
                deferred_factors=None if do_rot else deferred_factors)
            metadata["optimization_steps"]["pruning"] = prune_md
        if do_rot:
            optimized, rot_md = self._rotational_invariance(
                optimized, input_features,
                deferred_masks=deferred_masks, deferred_factors=deferred_factors)
            metadata["optimization_steps"]["rotation"] = rot_md
        if should_update:
            total_original = sum(int(np.prod(w.shape)) for w in weights.values()
                                 if hasattr(w, "ndim"))
            nz = [jnp.sum(w != 0) for w in optimized.values() if hasattr(w, "ndim")]
            if total_original > 0 and nz:
                total_optimized = int(jax.device_get(sum(nz)))   # single batched sync
                quality = total_optimized / total_original
                self.optimization_quality[f"step_{self.step_counter}"] = quality
                metadata["optimization_quality"] = quality
        metadata["quality_history"] = self.optimization_quality
        return optimized, metadata


# ----------------------------------- main ---------------------------------------

if __name__ == "__main__":
    key = jax.random.PRNGKey(0)
    k_mod, k_w1, k_w2, k_w3, k_b, k_x = jax.random.split(key, 6)
    D = 32
    # update_interval=1 so every call triggers the decomposition/rotation stages.
    module = QuantumWeightOptimizationModule(embedding_dim=D, sparsity_target=0.8,
                                             rank_threshold=0.1, num_rotations=4,
                                             update_interval=1, dynamic_sparsity=True,
                                             key=k_mod)
    weights = {
        "linear.weight": jax.random.normal(k_w1, (64, D), dtype=jnp.float32),
        "conv.weight": jax.random.normal(k_w2, (8, 2, 4, 4), dtype=jnp.float32),  # 2*4*4 == D
        "proj.weight": jax.random.normal(k_w3, (16, 48), dtype=jnp.float32),      # cols != D -> unrotatable fallback
        "linear.bias": jax.random.normal(k_b, (D,), dtype=jnp.float32),            # ndim<2 -> passthrough
    }
    input_features = jax.random.normal(k_x, (8, D), dtype=jnp.float32)

    scenarios = [
        ("decomposition", "pruning", "rotation"),   # fully fused recon*mask @ R kernel
        ("pruning",),                               # standalone prune kernel (int8 mask)
        ("rotation",),                              # plain bf16 rotate kernel
        ("decomposition", "rotation"),              # fused recon @ R kernel
        ("pruning", "rotation"),                    # mask-fused rotate kernel
        ("decomposition",),                         # plain low-rank kernel
        ("decomposition", "pruning"),               # mask-fused low-rank kernel
    ]
    for active in scenarios:
        out, md = module(weights, input_features, active_optimizations=active)
        for v in out.values():
            jax.block_until_ready(v)

    print("KERNEL_OK")
</pallas_src>

<mosaic_0001>
module attributes {stable_mosaic.version = 11 : i64} {
  func.func @_rot_fused_masked_kernel(%arg0: i32, %arg1: i32, %arg2: i32, %arg3: memref<64x16xbf16, #tpu.memory_space<vmem>>, %arg4: memref<16x32xbf16, #tpu.memory_space<vmem>>, %arg5: memref<64x32xi8, #tpu.memory_space<vmem>>, %arg6: memref<32x32xbf16, #tpu.memory_space<vmem>>, %arg7: memref<64x32xf32, #tpu.memory_space<vmem>>) attributes {dimension_semantics = [#tpu.dimension_semantics<parallel>, #tpu.dimension_semantics<parallel>, #tpu.dimension_semantics<arbitrary>], iteration_bounds = array<i64: 1, 1, 1>, scalar_prefetch = 0 : i64, scratch_operands = 0 : i64, tpu.core_type = #tpu.core_type<tc>, window_params = [{transform_indices = @transform_0, window_bounds = array<i64: 64, 16>}, {transform_indices = @transform_1, window_bounds = array<i64: 16, 32>}, {transform_indices = @transform_2, window_bounds = array<i64: 64, 32>}, {transform_indices = @transform_3, window_bounds = array<i64: 32, 32>}, {transform_indices = @transform_4, window_bounds = array<i64: 64, 32>}]} {
    %c0_i32 = arith.constant 0 : i32
    %0 = arith.cmpi eq, %arg2, %c0_i32 : i32
    %1 = arith.extui %0 : i1 to i32
    %c0_i32_0 = arith.constant 0 : i32
    %2 = arith.cmpi ne, %1, %c0_i32_0 : i32
    scf.if %2 {
      %cst_13 = arith.constant 0.000000e+00 : f32
      %15 = vector.broadcast %cst_13 : f32 to vector<64x32xf32>
      %c0_14 = arith.constant 0 : index
      %c0_15 = arith.constant 0 : index
      %16 = vector.load %arg7[%c0_14, %c0_15] : memref<64x32xf32, #tpu.memory_space<vmem>>, vector<64x32xf32>
      tpu.vector_store %arg7[%c0_14, %c0_15], %15 {strides = array<i32>} : memref<64x32xf32, #tpu.memory_space<vmem>>, vector<64x32xf32>,
    } else {
    }
    %c0 = arith.constant 0 : index
    %c0_1 = arith.constant 0 : index
    %3 = vector.load %arg3[%c0, %c0_1] : memref<64x16xbf16, #tpu.memory_space<vmem>>, vector<64x16xbf16>
    %c0_2 = arith.constant 0 : index
    %c0_3 = arith.constant 0 : index
    %4 = vector.load %arg4[%c0_2, %c0_3] : memref<16x32xbf16, #tpu.memory_space<vmem>>, vector<16x32xbf16>
    %cst = arith.constant dense<0.000000e+00> : vector<64x32xf32>
    %5 = tpu.matmul %3, %4, %cst {dimension_numbers = #tpu.dot_dimension_numbers<[1], [0], [0], [1], [0, 0, 1, 1], [], []>} : vector<64x16xbf16>, vector<16x32xbf16>, vector<64x32xf32> -> vector<64x32xf32>
    %c0_4 = arith.constant 0 : index
    %c0_5 = arith.constant 0 : index
    %6 = vector.load %arg5[%c0_4, %c0_5] : memref<64x32xi8, #tpu.memory_space<vmem>>, vector<64x32xi8>
    %7 = arith.sitofp %6 : vector<64x32xi8> to vector<64x32xf32>
    %8 = arith.mulf %5, %7 : vector<64x32xf32>
    %c0_6 = arith.constant 0 : index
    %c0_7 = arith.constant 0 : index
    %9 = vector.load %arg7[%c0_6, %c0_7] : memref<64x32xf32, #tpu.memory_space<vmem>>, vector<64x32xf32>
    %10 = arith.truncf %8 : vector<64x32xf32> to vector<64x32xbf16>
    %c0_8 = arith.constant 0 : index
    %c0_9 = arith.constant 0 : index
    %11 = vector.load %arg6[%c0_8, %c0_9] : memref<32x32xbf16, #tpu.memory_space<vmem>>, vector<32x32xbf16>
    %cst_10 = arith.constant dense<0.000000e+00> : vector<64x32xf32>
    %12 = tpu.matmul %10, %11, %cst_10 {dimension_numbers = #tpu.dot_dimension_numbers<[1], [0], [0], [1], [0, 0, 1, 1], [], []>} : vector<64x32xbf16>, vector<32x32xbf16>, vector<64x32xf32> -> vector<64x32xf32>
    %13 = arith.addf %9, %12 : vector<64x32xf32>
    %c0_11 = arith.constant 0 : index
    %c0_12 = arith.constant 0 : index
    %14 = vector.load %arg7[%c0_11, %c0_12] : memref<64x32xf32, #tpu.memory_space<vmem>>, vector<64x32xf32>
    tpu.vector_store %arg7[%c0_11, %c0_12], %13 {strides = array<i32>} : memref<64x32xf32, #tpu.memory_space<vmem>>, vector<64x32xf32>,
    return
  }
  func.func @transform_0(%arg0: i32, %arg1: i32, %arg2: i32) -> (i32, i32) {
    %c0_i32 = arith.constant 0 : i32
    %c0_i32_0 = arith.constant 0 : i32
    return %arg0, %c0_i32 : i32, i32
  }
  func.func @transform_1(%arg0: i32, %arg1: i32, %arg2: i32) -> (i32, i32) {
    %c0_i32 = arith.constant 0 : i32
    %c0_i32_0 = arith.constant 0 : i32
    return %c0_i32, %arg2 : i32, i32
  }
  func.func @transform_2(%arg0: i32, %arg1: i32, %arg2: i32) -> (i32, i32) {
    %c0_i32 = arith.constant 0 : i32
    return %arg0, %arg2 : i32, i32
  }
  func.func @transform_3(%arg0: i32, %arg1: i32, %arg2: i32) -> (i32, i32) {
    %c0_i32 = arith.constant 0 : i32
    return %arg2, %arg1 : i32, i32
  }
  func.func @transform_4(%arg0: i32, %arg1: i32, %arg2: i32) -> (i32, i32) {
    %c0_i32 = arith.constant 0 : i32
    return %arg0, %arg1 : i32, i32
  }
}

</mosaic_0001>

<bundles_post_ra>
// kernel: tpu_custom_call.1
= control target key start
LH: loop header
LB: loop body
LE: loop exit
PB: predicated region body
PF: predicated region fallthrough
CT: control target
= control target key end

     0   :  { %vm67_vm0 = vcmask 130048   ;;  %vm22_vm1 = vcmask 261120   ;;  %v353_v7 = vmov 0.0   ;;  %s498_s1 = inlined_call_operand.vmem [shape: bf16[16,32], index: 1, kind: input, shape index: {}]   ;;  %s499_s0 = inlined_call_operand.vmem [shape: bf16[64,16], index: 0, kind: input, shape index: {}]   ;;  %s500_s3 = inlined_call_operand.vmem [shape: bf16[32,32], index: 3, kind: input, shape index: {}]   ;;  %s501_s4 = inlined_call_operand.vmem [shape: f32[64,32], index: 4, kind: output, shape index: {}]   ;;  %s502_s2 = inlined_call_operand.vmem [shape: s8[64,32], index: 2, kind: input, shape index: {}]  }
   0x1   :  { %v346_v0 = vld [vmem:[%s498_s1] sm:$0xff]   ;;  %v348_v2 = vld [vmem:[%s499_s0 + $0x8] sm:$0xff]   ;;  %v349_v3 = vld [vmem:[%s499_s0 + $0x10] sm:$0xff]   ;;  %25 = vst.msk [vmem:[%s501_s4 + $0x10] sm:$0xff] %vm22_vm1, %v353_v7 }
   0x2   :  { %v347_v1 = vld [vmem:[%s499_s0] sm:$0xff]   ;;  %323 = vmatprep.subr.bf16.mxu0 %v346_v0  ;;  %v350_v4 = vld [vmem:[%s499_s0 + $0x18] sm:$0xff]   ;;  %v352_v6 = vld [vmem:[%s500_s3 + $0x8] sm:$0xff]   ;;  %23 = vst.msk [vmem:[%s501_s4] sm:$0xff] %vm22_vm1, %v353_v7 }
   0x3   :  { %324 = vmatpush3.bf16.msra.mxu0 %v346_v0  ;;  %325 = vmatprep.mubr.msk.bf16.mxu0 %vm67_vm0, %v347_v1  ;;  %v351_v5 = vld [vmem:[%s500_s3] sm:$0xff]   ;;  %24 = vst.msk [vmem:[%s501_s4 + $0x8] sm:$0xff] %vm22_vm1, %v353_v7  ;;  %26 = vst.msk [vmem:[%s501_s4 + $0x18] sm:$0xff] %vm22_vm1, %v353_v7  ;;  %v146_v18 = vld [vmem:[%s502_s2 + $0x8] sm:$0xff] }
   0x4   :  { %333 = vmatprep.subr.bf16.mxu1 %v351_v5  ;;  %27 = vst.msk [vmem:[%s501_s4 + $0x20] sm:$0xff] %vm22_vm1, %v353_v7  ;;  %28 = vst.msk [vmem:[%s501_s4 + $0x28] sm:$0xff] %vm22_vm1, %v353_v7  ;;  %v145_v8 = vld [vmem:[%s502_s2] sm:$0xff]  ;;  %v153_v24 = vunpack.c.2.s8 %v146_v18  ;;  %v154_v25 = vunpack.c.3.s8 %v146_v18  ;;  %v151_v28 = vunpack.c.0.s8 %v146_v18  ;;  %v152_v29 = vunpack.c.1.s8 %v146_v18 }
   0x5   :  { %334 = vmatpush3.bf16.msra.mxu1 %v351_v5  ;;  %29 = vst.msk [vmem:[%s501_s4 + $0x30] sm:$0xff] %vm22_vm1, %v353_v7  ;;  %30 = vst.msk [vmem:[%s501_s4 + $0x38] sm:$0xff] %vm22_vm1, %v353_v7  ;;  %v149_v9 = vunpack.c.2.s8 %v145_v8  ;;  %v150_v10 = vunpack.c.3.s8 %v145_v8  ;;  %v147_v11 = vunpack.c.0.s8 %v145_v8  ;;  %v148_v12 = vunpack.c.1.s8 %v145_v8 }
   0x6   :  { %326 = vmatmul.mubr.msk.bf16.vlgmr.msra.gmra.mrb[0].mxu0 %vm67_vm0, %v348_v2  ;;  %335 = vmatprep.subr.bf16.mxu1 %v352_v6  ;;  %v161_v32 = vcvt.s32.f32 %v153_v24  ;;  %v162_v33 = vcvt.s32.f32 %v154_v25  ;;  %v159_v35 = vcvt.s32.f32 %v151_v28  ;;  %v160_v36 = vcvt.s32.f32 %v152_v29 }
   0x7   :  { %329 = vmatprep.mubr.msk.bf16.mxu0 %vm67_vm0, %v349_v3  ;;  %v157_v13 = vcvt.s32.f32 %v149_v9  ;;  %v158_v14 = vcvt.s32.f32 %v150_v10  ;;  %v155_v16 = vcvt.s32.f32 %v147_v11  ;;  %v156_v17 = vcvt.s32.f32 %v148_v12 }
   0x8   :  { %v173_v46 = vld [vmem:[%s501_s4 + $0x10] sm:$0xff] }
   0x9   :  { %336 = vmatpush3.bf16.msra.mxu1 %v352_v6  ;;  %v171_v47 = vld [vmem:[%s501_s4] sm:$0xff] }
   0xa   :  { %v174_v49 = vld [vmem:[%s501_s4 + $0x18] sm:$0xff]  ;;  %v172_v52 = vld [vmem:[%s501_s4 + $0x8] sm:$0xff] }
   0xb   :  { %v175_v59 = vld [vmem:[%s501_s4 + $0x20] sm:$0xff]  ;;  %v176_v0 = vld [vmem:[%s501_s4 + $0x28] sm:$0xff] }
   0xc   :  { %v177_v58 = vld [vmem:[%s501_s4 + $0x30] sm:$0xff]  ;;  %v178_v61 = vld [vmem:[%s501_s4 + $0x38] sm:$0xff] }
   0xe   :  { %330 = vmatmul.mubr.msk.bf16.gmra.mrb[4].mxu0 %vm67_vm0, %v350_v4 }
  0xd9   :  { %v327_v15 = vpop.f32.mrb[0].mxu0 }
  0xda   :  { %v114_v19 = vpop.f32.mrb[1].mxu0  ;;  %v165_v21 = vmul.f32 %v327_v15, %v157_v13 }
  0xdb   :  { %v328_v20 = vpop.f32.mrb[2].mxu0  ;;  %v163_v26 = vmul.f32 %v155_v16, %v114_v19 }
  0xdc   :  { %v166_v22 = vmul.f32 %v328_v20, %v158_v14  ;;  %v117_v23 = vpop.f32.mrb[3].mxu0 }
  0xdd   :  { %v164_v27 = vmul.f32 %v156_v17, %v117_v23 }
  0xde   :  { %v180_v30 = vpack.c.bf16 %v166_v22, %v165_v21 }
  0xdf   :  { %v179_v31 = vpack.c.bf16 %v164_v27, %v163_v26 }
  0xe1   :  { %v331_v34 = vpop.f32.mrb[4].mxu0  ;;  %337 = vmatprep.mubr.msk.bf16.mxu1 %vm22_vm1, %v179_v31 }
  0xe2   :  { %v130_v37 = vpop.f32.mrb[5].mxu0  ;;  %338 = vmatmul.mubr.msk.bf16.vlgmr.msra.gmra.mrb[0].mxu1 %vm22_vm1, %v180_v30  ;;  %v169_v39 = vmul.f32 %v331_v34, %v161_v32 }
  0xe3   :  { %v332_v38 = vpop.f32.mrb[6].mxu0  ;;  %v167_v42 = vmul.f32 %v159_v35, %v130_v37 }
  0xe4   :  { %v170_v40 = vmul.f32 %v332_v38, %v162_v33  ;;  %v133_v41 = vpop.f32.mrb[7].mxu0 }
  0xe5   :  { %v168_v43 = vmul.f32 %v160_v36, %v133_v41 }
  0xe6   :  { %v182_v44 = vpack.c.bf16 %v170_v40, %v169_v39 }
  0xe7   :  { %v181_v45 = vpack.c.bf16 %v168_v43, %v167_v42 }
  0xe9   :  { %341 = vmatprep.mubr.msk.bf16.mxu1 %vm22_vm1, %v181_v45 }
  0xea   :  { %342 = vmatmul.mubr.msk.bf16.gmra.mrb[4].mxu1 %vm22_vm1, %v182_v44 }
 0x1b5   :  { %v339_v48 = vpop.f32.mrb[0].mxu1 }
 0x1b6   :  { %v279_v50 = vadd.f32 %v339_v48, %v173_v46  ;;  %v246_v51 = vpop.f32.mrb[1].mxu1 }
 0x1b7   :  { %v277_v53 = vadd.f32 %v246_v51, %v171_v47  ;;  %v340_v54 = vpop.f32.mrb[2].mxu1 }
 0x1b8   :  { %287 = vst.msk [vmem:[%s501_s4 + $0x10] sm:$0xff] %vm22_vm1, %v279_v50  ;;  %v280_v55 = vadd.f32 %v340_v54, %v174_v49  ;;  %v249_v56 = vpop.f32.mrb[3].mxu1 }
 0x1b9   :  { %285 = vst.msk [vmem:[%s501_s4] sm:$0xff] %vm22_vm1, %v277_v53  ;;  %v278_v57 = vadd.f32 %v249_v56, %v172_v52 }
 0x1ba   :  { %288 = vst.msk [vmem:[%s501_s4 + $0x18] sm:$0xff] %vm22_vm1, %v280_v55 }
 0x1bb   :  { %286 = vst.msk [vmem:[%s501_s4 + $0x8] sm:$0xff] %vm22_vm1, %v278_v57 }
 0x1bd   :  { %v343_v60 = vpop.f32.mrb[4].mxu1 }
 0x1be   :  { %v283_v62 = vadd.f32 %v343_v60, %v177_v58  ;;  %v262_v63 = vpop.f32.mrb[5].mxu1 }
 0x1bf   :  { %v281_v1 = vadd.f32 %v262_v63, %v175_v59  ;;  %v344_v2 = vpop.f32.mrb[6].mxu1 }
 0x1c0   :  { %291 = vst.msk [vmem:[%s501_s4 + $0x30] sm:$0xff] %vm22_vm1, %v283_v62  ;;  %v284_v3 = vadd.f32 %v344_v2, %v178_v61  ;;  %v265_v4 = vpop.f32.mrb[7].mxu1 }
 0x1c1   :  { %289 = vst.msk [vmem:[%s501_s4 + $0x20] sm:$0xff] %vm22_vm1, %v281_v1  ;;  %v282_v5 = vadd.f32 %v265_v4, %v176_v0 }
 0x1c2   :  { %292 = vst.msk [vmem:[%s501_s4 + $0x38] sm:$0xff] %vm22_vm1, %v284_v3 }
 0x1c3   :  { %290 = vst.msk [vmem:[%s501_s4 + $0x28] sm:$0xff] %vm22_vm1, %v282_v5 }

</bundles_post_ra>
